<compile_context>
chip_gen: v6e
topology: v6e:2x2x1
jax: 0.10.0
libtpu: 0.0.40
codegen_flags: <defaults>
</compile_context>

<pallas_src>
import functools

import jax
import jax.numpy as jnp
from jax.experimental import pallas as pl
from jax.experimental.pallas import tpu as pltpu


LANE = 128


def _round_up(n, m):
    return ((n + m - 1) // m) * m


# ----------------------------------------------------------------------------- kernel
def _dqn_mlp_kernel(x_ref,
                    w1_ref, b1_ref,
                    w2_ref, b2_ref,
                    w3_ref, b3_ref,
                    w4_ref, b4_ref,
                    w5_ref, b5_ref,
                    out_ref):
    """Forward for one batch tile: 5 matmuls (bf16 in, f32 acc) + ReLU + Sigmoid."""

    def linear(h_f32, w_ref, b_ref, relu):
        # bf16 MXU inputs, f32 accumulation; bias add + ReLU in f32 on the VPU.
        y = jnp.dot(h_f32.astype(jnp.bfloat16), w_ref[...],
                    preferred_element_type=jnp.float32) + b_ref[...]
        return jnp.maximum(y, 0.0) if relu else y

    h = x_ref[...]                                    # (TB, state_len) f32
    h = linear(h, w1_ref, b1_ref, relu=True)          # (TB, 512)
    h = linear(h, w2_ref, b2_ref, relu=True)          # (TB, 256)
    h = linear(h, w3_ref, b3_ref, relu=True)          # (TB, 128)
    h = linear(h, w4_ref, b4_ref, relu=True)          # (TB, 128)  (81 padded)
    logits = linear(h, w5_ref, b5_ref, relu=False)    # (TB, 128)  (n_actions padded)

    # Exact sigmoid: exp runs on the EUP; the divide is negligible at 128 lanes.
    out_ref[...] = 1.0 / (1.0 + jnp.exp(-logits))


# ----------------------------------------------------------------------------- wrapper
def dqn_forward(x, padded_params, n_actions, tb=256):
    """x: (B, state_len) f32.  padded_params: list of (W_bf16[in_pad,out_pad], b_f32[1,out_pad])."""
    B, state_len = x.shape
    out_pad = padded_params[-1][0].shape[1]

    # Batch tile: fill the MXU M dimension when B is large, but never exceed B (padded to 8).
    TB = min(tb, _round_up(B, 8))
    B_pad = _round_up(B, TB)
    if B_pad != B:
        x = jnp.pad(x, ((0, B_pad - B), (0, 0)))
    grid = (B_pad // TB,)

    flat = []
    for w, b in padded_params:
        flat.extend([w, b])

    # x / out march over the batch; weights & biases are grid-invariant (VMEM-resident).
    x_spec = pl.BlockSpec((TB, state_len), lambda i: (i, 0))
    param_specs = [pl.BlockSpec(p.shape, lambda i: (0, 0)) for p in flat]
    out_spec = pl.BlockSpec((TB, out_pad), lambda i: (i, 0))

    out = pl.pallas_call(
        _dqn_mlp_kernel,
        out_shape=jax.ShapeDtypeStruct((B_pad, out_pad), jnp.float32),
        grid=grid,
        in_specs=[x_spec] + param_specs,
        out_specs=out_spec,
        compiler_params=pltpu.CompilerParams(
            dimension_semantics=("parallel",)),      # megacore split on v7x
    )(x, *flat)

    return out[:B, :n_actions]


# ----------------------------------------------------------------------------- params
def init_params(key, state_len, n_actions):
    """f32 params mimicking PyTorch Linear default init U(-1/sqrt(fan_in), 1/sqrt(fan_in)).
    Weights stored as [in, out] so the kernel computes y = x @ W + b."""
    dims = [state_len, 512, 256, 128, 81, n_actions]
    params = []
    for i in range(len(dims) - 1):
        fan_in, fan_out = dims[i], dims[i + 1]
        key, kw, kb = jax.random.split(key, 3)
        bound = 1.0 / jnp.sqrt(float(fan_in))
        w = jax.random.uniform(kw, (fan_in, fan_out), jnp.float32, -bound, bound)
        b = jax.random.uniform(kb, (1, fan_out), jnp.float32, -bound, bound)
        params.append((w, b))
    return params


def prepare_params(params_f32):
    """Zero-pad every layer's output width to a multiple of 128 lanes (81 -> 128,
    n_actions -> 128) and cast weights to bf16.  Padding is exact-zero so the
    sliced result is numerically identical to the unpadded network."""
    padded = []
    prev_out_pad = None
    for w, b in params_f32:
        fin, fout = w.shape
        fin_pad = fin if prev_out_pad is None else prev_out_pad
        fout_pad = _round_up(fout, LANE)
        w_p = jnp.zeros((fin_pad, fout_pad), jnp.float32).at[:fin, :fout].set(w)
        b_p = jnp.zeros((1, fout_pad), jnp.float32).at[:, :fout].set(b)
        padded.append((w_p.astype(jnp.bfloat16), b_p))
        prev_out_pad = fout_pad
    return padded


# ----------------------------------------------------------------------------- reference
def reference_forward(x, padded_params, n_actions):
    """Pure-JAX reference using the same bf16 weights / f32 accumulation."""
    h = x
    for i, (w, b) in enumerate(padded_params):
        y = jnp.dot(h.astype(jnp.bfloat16), w,
                    preferred_element_type=jnp.float32) + b
        h = jnp.maximum(y, 0.0) if i < len(padded_params) - 1 else y
    return (1.0 / (1.0 + jnp.exp(-h)))[:, :n_actions]


# ----------------------------------------------------------------------------- main
if __name__ == "__main__":
    state_len = 32
    n_actions = 9

    key = jax.random.PRNGKey(0)
    key, kx, kx2 = jax.random.split(key, 3)
    params_f32 = init_params(key, state_len, n_actions)
    padded = prepare_params(params_f32)

    run = functools.partial(dqn_forward, n_actions=n_actions)

    # Small inference-style batch (grid = 1 tile, batch padded 2 -> 8).
    x_small = jax.random.normal(kx, (2, state_len), jnp.float32)
    out_small = jax.block_until_ready(run(x_small, padded))
    ref_small = reference_forward(x_small, padded, n_actions)
    assert out_small.shape == (2, n_actions)
    assert jnp.allclose(out_small, ref_small, atol=2e-3, rtol=2e-3), \
        "mismatch vs reference (small batch)"

    # Larger, non-tile-aligned batch exercising the batch-tiled grid
    # (300 -> B_pad=512, TB=256 -> 2 grid steps + batch padding).
    x_big = jax.random.normal(kx2, (300, state_len), jnp.float32)
    out_big = jax.block_until_ready(run(x_big, padded))
    ref_big = reference_forward(x_big, padded, n_actions)
    assert out_big.shape == (300, n_actions)
    assert jnp.allclose(out_big, ref_big, atol=2e-3, rtol=2e-3), \
        "mismatch vs reference (tiled batch)"

    # TODO(synk): Adam optimizer, MSE loss, and save/load from the PyTorch module
    # are training/IO utilities, not part of the forward pass, and are not translated.

    print("KERNEL_OK")
</pallas_src>

<mosaic_0001>
module attributes {stable_mosaic.version = 11 : i64} {
  func.func @_dqn_mlp_kernel(%arg0: i32, %arg1: memref<8x32xf32, #tpu.memory_space<vmem>>, %arg2: memref<32x512xbf16, #tpu.memory_space<vmem>>, %arg3: memref<1x512xf32, #tpu.memory_space<vmem>>, %arg4: memref<512x256xbf16, #tpu.memory_space<vmem>>, %arg5: memref<1x256xf32, #tpu.memory_space<vmem>>, %arg6: memref<256x128xbf16, #tpu.memory_space<vmem>>, %arg7: memref<1x128xf32, #tpu.memory_space<vmem>>, %arg8: memref<128x128xbf16, #tpu.memory_space<vmem>>, %arg9: memref<1x128xf32, #tpu.memory_space<vmem>>, %arg10: memref<128x128xbf16, #tpu.memory_space<vmem>>, %arg11: memref<1x128xf32, #tpu.memory_space<vmem>>, %arg12: memref<8x128xf32, #tpu.memory_space<vmem>>) attributes {dimension_semantics = [#tpu.dimension_semantics<parallel>], iteration_bounds = array<i64: 1>, scalar_prefetch = 0 : i64, scratch_operands = 0 : i64, tpu.core_type = #tpu.core_type<tc>, window_params = [{transform_indices = @transform_0, window_bounds = array<i64: 8, 32>}, {pipeline_mode = #tpu.pipeline_mode<synchronous>, transform_indices = @transform_1, window_bounds = array<i64: 32, 512>}, {pipeline_mode = #tpu.pipeline_mode<synchronous>, transform_indices = @transform_2, window_bounds = array<i64: 1, 512>}, {pipeline_mode = #tpu.pipeline_mode<synchronous>, transform_indices = @transform_3, window_bounds = array<i64: 512, 256>}, {pipeline_mode = #tpu.pipeline_mode<synchronous>, transform_indices = @transform_4, window_bounds = array<i64: 1, 256>}, {pipeline_mode = #tpu.pipeline_mode<synchronous>, transform_indices = @transform_5, window_bounds = array<i64: 256, 128>}, {pipeline_mode = #tpu.pipeline_mode<synchronous>, transform_indices = @transform_6, window_bounds = array<i64: 1, 128>}, {pipeline_mode = #tpu.pipeline_mode<synchronous>, transform_indices = @transform_7, window_bounds = array<i64: 128, 128>}, {pipeline_mode = #tpu.pipeline_mode<synchronous>, transform_indices = @transform_8, window_bounds = array<i64: 1, 128>}, {pipeline_mode = #tpu.pipeline_mode<synchronous>, transform_indices = @transform_9, window_bounds = array<i64: 128, 128>}, {pipeline_mode = #tpu.pipeline_mode<synchronous>, transform_indices = @transform_10, window_bounds = array<i64: 1, 128>}, {transform_indices = @transform_11, window_bounds = array<i64: 8, 128>}]} {
    %c0 = arith.constant 0 : index
    %c0_0 = arith.constant 0 : index
    %0 = vector.load %arg1[%c0, %c0_0] : memref<8x32xf32, #tpu.memory_space<vmem>>, vector<8x32xf32>
    %1 = arith.truncf %0 : vector<8x32xf32> to vector<8x32xbf16>
    %c0_1 = arith.constant 0 : index
    %c0_2 = arith.constant 0 : index
    %2 = vector.load %arg2[%c0_1, %c0_2] : memref<32x512xbf16, #tpu.memory_space<vmem>>, vector<32x512xbf16>
    %cst = arith.constant dense<0.000000e+00> : vector<8x512xf32>
    %3 = tpu.matmul %1, %2, %cst {dimension_numbers = #tpu.dot_dimension_numbers<[1], [0], [0], [1], [0, 0, 1, 1], [], []>} : vector<8x32xbf16>, vector<32x512xbf16>, vector<8x512xf32> -> vector<8x512xf32>
    %c0_3 = arith.constant 0 : index
    %c0_4 = arith.constant 0 : index
    %4 = vector.load %arg3[%c0_3, %c0_4] : memref<1x512xf32, #tpu.memory_space<vmem>>, vector<1x512xf32>
    %5 = vector.broadcast %4 : vector<1x512xf32> to vector<8x512xf32>
    %6 = arith.addf %3, %5 : vector<8x512xf32>
    %cst_5 = arith.constant 0.000000e+00 : f32
    %7 = vector.broadcast %cst_5 : f32 to vector<8x512xf32>
    %8 = arith.maximumf %6, %7 : vector<8x512xf32>
    %9 = arith.truncf %8 : vector<8x512xf32> to vector<8x512xbf16>
    %c0_6 = arith.constant 0 : index
    %c0_7 = arith.constant 0 : index
    %10 = vector.load %arg4[%c0_6, %c0_7] : memref<512x256xbf16, #tpu.memory_space<vmem>>, vector<512x256xbf16>
    %cst_8 = arith.constant dense<0.000000e+00> : vector<8x256xf32>
    %11 = tpu.matmul %9, %10, %cst_8 {dimension_numbers = #tpu.dot_dimension_numbers<[1], [0], [0], [1], [0, 0, 1, 1], [], []>} : vector<8x512xbf16>, vector<512x256xbf16>, vector<8x256xf32> -> vector<8x256xf32>
    %c0_9 = arith.constant 0 : index
    %c0_10 = arith.constant 0 : index
    %12 = vector.load %arg5[%c0_9, %c0_10] : memref<1x256xf32, #tpu.memory_space<vmem>>, vector<1x256xf32>
    %13 = vector.broadcast %12 : vector<1x256xf32> to vector<8x256xf32>
    %14 = arith.addf %11, %13 : vector<8x256xf32>
    %cst_11 = arith.constant 0.000000e+00 : f32
    %15 = vector.broadcast %cst_11 : f32 to vector<8x256xf32>
    %16 = arith.maximumf %14, %15 : vector<8x256xf32>
    %17 = arith.truncf %16 : vector<8x256xf32> to vector<8x256xbf16>
    %c0_12 = arith.constant 0 : index
    %c0_13 = arith.constant 0 : index
    %18 = vector.load %arg6[%c0_12, %c0_13] : memref<256x128xbf16, #tpu.memory_space<vmem>>, vector<256x128xbf16>
    %cst_14 = arith.constant dense<0.000000e+00> : vector<8x128xf32>
    %19 = tpu.matmul %17, %18, %cst_14 {dimension_numbers = #tpu.dot_dimension_numbers<[1], [0], [0], [1], [0, 0, 1, 1], [], []>} : vector<8x256xbf16>, vector<256x128xbf16>, vector<8x128xf32> -> vector<8x128xf32>
    %c0_15 = arith.constant 0 : index
    %c0_16 = arith.constant 0 : index
    %20 = vector.load %arg7[%c0_15, %c0_16] : memref<1x128xf32, #tpu.memory_space<vmem>>, vector<1x128xf32>
    %21 = vector.broadcast %20 : vector<1x128xf32> to vector<8x128xf32>
    %22 = arith.addf %19, %21 : vector<8x128xf32>
    %cst_17 = arith.constant 0.000000e+00 : f32
    %23 = vector.broadcast %cst_17 : f32 to vector<8x128xf32>
    %24 = arith.maximumf %22, %23 : vector<8x128xf32>
    %25 = arith.truncf %24 : vector<8x128xf32> to vector<8x128xbf16>
    %c0_18 = arith.constant 0 : index
    %c0_19 = arith.constant 0 : index
    %26 = vector.load %arg8[%c0_18, %c0_19] : memref<128x128xbf16, #tpu.memory_space<vmem>>, vector<128x128xbf16>
    %cst_20 = arith.constant dense<0.000000e+00> : vector<8x128xf32>
    %27 = tpu.matmul %25, %26, %cst_20 {dimension_numbers = #tpu.dot_dimension_numbers<[1], [0], [0], [1], [0, 0, 1, 1], [], []>} : vector<8x128xbf16>, vector<128x128xbf16>, vector<8x128xf32> -> vector<8x128xf32>
    %c0_21 = arith.constant 0 : index
    %c0_22 = arith.constant 0 : index
    %28 = vector.load %arg9[%c0_21, %c0_22] : memref<1x128xf32, #tpu.memory_space<vmem>>, vector<1x128xf32>
    %29 = vector.broadcast %28 : vector<1x128xf32> to vector<8x128xf32>
    %30 = arith.addf %27, %29 : vector<8x128xf32>
    %cst_23 = arith.constant 0.000000e+00 : f32
    %31 = vector.broadcast %cst_23 : f32 to vector<8x128xf32>
    %32 = arith.maximumf %30, %31 : vector<8x128xf32>
    %33 = arith.truncf %32 : vector<8x128xf32> to vector<8x128xbf16>
    %c0_24 = arith.constant 0 : index
    %c0_25 = arith.constant 0 : index
    %34 = vector.load %arg10[%c0_24, %c0_25] : memref<128x128xbf16, #tpu.memory_space<vmem>>, vector<128x128xbf16>
    %cst_26 = arith.constant dense<0.000000e+00> : vector<8x128xf32>
    %35 = tpu.matmul %33, %34, %cst_26 {dimension_numbers = #tpu.dot_dimension_numbers<[1], [0], [0], [1], [0, 0, 1, 1], [], []>} : vector<8x128xbf16>, vector<128x128xbf16>, vector<8x128xf32> -> vector<8x128xf32>
    %c0_27 = arith.constant 0 : index
    %c0_28 = arith.constant 0 : index
    %36 = vector.load %arg11[%c0_27, %c0_28] : memref<1x128xf32, #tpu.memory_space<vmem>>, vector<1x128xf32>
    %37 = vector.broadcast %36 : vector<1x128xf32> to vector<8x128xf32>
    %38 = arith.addf %35, %37 : vector<8x128xf32>
    %cst_29 = arith.constant 0.000000e+00 : f32
    %39 = vector.broadcast %cst_29 : f32 to vector<8x128xf32>
    %40 = arith.subf %39, %38 : vector<8x128xf32>
    %41 = math.exp %40 : vector<8x128xf32>
    %cst_30 = arith.constant 1.000000e+00 : f32
    %42 = vector.broadcast %cst_30 : f32 to vector<8x128xf32>
    %43 = arith.addf %42, %41 : vector<8x128xf32>
    %cst_31 = arith.constant 1.000000e+00 : f32
    %44 = vector.broadcast %cst_31 : f32 to vector<8x128xf32>
    %45 = arith.divf %44, %43 : vector<8x128xf32>
    %c0_32 = arith.constant 0 : index
    %c0_33 = arith.constant 0 : index
    %46 = vector.load %arg12[%c0_32, %c0_33] : memref<8x128xf32, #tpu.memory_space<vmem>>, vector<8x128xf32>
    tpu.vector_store %arg12[%c0_32, %c0_33], %45 {strides = array<i32>} : memref<8x128xf32, #tpu.memory_space<vmem>>, vector<8x128xf32>,
    return
  }
  func.func @transform_0(%arg0: i32) -> (i32, i32) {
    %c0_i32 = arith.constant 0 : i32
    %c0_i32_0 = arith.constant 0 : i32
    return %arg0, %c0_i32 : i32, i32
  }
  func.func @transform_1(%arg0: i32) -> (i32, i32) {
    %c0_i32 = arith.constant 0 : i32
    %c0_i32_0 = arith.constant 0 : i32
    %c0_i32_1 = arith.constant 0 : i32
    return %c0_i32, %c0_i32_0 : i32, i32
  }
  func.func @transform_2(%arg0: i32) -> (i32, i32) {
    %c0_i32 = arith.constant 0 : i32
    %c0_i32_0 = arith.constant 0 : i32
    %c0_i32_1 = arith.constant 0 : i32
    return %c0_i32, %c0_i32_0 : i32, i32
  }
  func.func @transform_3(%arg0: i32) -> (i32, i32) {
    %c0_i32 = arith.constant 0 : i32
    %c0_i32_0 = arith.constant 0 : i32
    %c0_i32_1 = arith.constant 0 : i32
    return %c0_i32, %c0_i32_0 : i32, i32
  }
  func.func @transform_4(%arg0: i32) -> (i32, i32) {
    %c0_i32 = arith.constant 0 : i32
    %c0_i32_0 = arith.constant 0 : i32
    %c0_i32_1 = arith.constant 0 : i32
    return %c0_i32, %c0_i32_0 : i32, i32
  }
  func.func @transform_5(%arg0: i32) -> (i32, i32) {
    %c0_i32 = arith.constant 0 : i32
    %c0_i32_0 = arith.constant 0 : i32
    %c0_i32_1 = arith.constant 0 : i32
    return %c0_i32, %c0_i32_0 : i32, i32
  }
  func.func @transform_6(%arg0: i32) -> (i32, i32) {
    %c0_i32 = arith.constant 0 : i32
    %c0_i32_0 = arith.constant 0 : i32
    %c0_i32_1 = arith.constant 0 : i32
    return %c0_i32, %c0_i32_0 : i32, i32
  }
  func.func @transform_7(%arg0: i32) -> (i32, i32) {
    %c0_i32 = arith.constant 0 : i32
    %c0_i32_0 = arith.constant 0 : i32
    %c0_i32_1 = arith.constant 0 : i32
    return %c0_i32, %c0_i32_0 : i32, i32
  }
  func.func @transform_8(%arg0: i32) -> (i32, i32) {
    %c0_i32 = arith.constant 0 : i32
    %c0_i32_0 = arith.constant 0 : i32
    %c0_i32_1 = arith.constant 0 : i32
    return %c0_i32, %c0_i32_0 : i32, i32
  }
  func.func @transform_9(%arg0: i32) -> (i32, i32) {
    %c0_i32 = arith.constant 0 : i32
    %c0_i32_0 = arith.constant 0 : i32
    %c0_i32_1 = arith.constant 0 : i32
    return %c0_i32, %c0_i32_0 : i32, i32
  }
  func.func @transform_10(%arg0: i32) -> (i32, i32) {
    %c0_i32 = arith.constant 0 : i32
    %c0_i32_0 = arith.constant 0 : i32
    %c0_i32_1 = arith.constant 0 : i32
    return %c0_i32, %c0_i32_0 : i32, i32
  }
  func.func @transform_11(%arg0: i32) -> (i32, i32) {
    %c0_i32 = arith.constant 0 : i32
    %c0_i32_0 = arith.constant 0 : i32
    return %arg0, %c0_i32 : i32, i32
  }
}

</mosaic_0001>

<bundles_post_ra>
// kernel: tpu_custom_call.1
= control target key start
LH: loop header
LB: loop body
LE: loop exit
PB: predicated region body
PF: predicated region fallthrough
CT: control target
= control target key end

     0   :  { %16 = vsyncpa [#allocation3], 0  ;;  %s1881_s0 = inlined_call_operand.hbm [shape: f32[8,32], index: 0, kind: input, shape index: {}]   ;;  %s1882_s1 = inlined_call_operand.hbm [shape: bf16[32,512], index: 1, kind: input, shape index: {}]   ;;  %s1883_s2 = inlined_call_operand.hbm [shape: f32[1,512], index: 2, kind: input, shape index: {}]   ;;  %s1884_s3 = inlined_call_operand.hbm [shape: bf16[512,256], index: 3, kind: input, shape index: {}]   ;;  %s1885_s4 = inlined_call_operand.vmem [shape: f32[1,256], index: 4, kind: input, shape index: {}]   ;;  %s1886_s5 = inlined_call_operand.hbm [shape: bf16[256,128], index: 5, kind: input, shape index: {}]   ;;  %s1887_s6 = inlined_call_operand.vmem [shape: f32[1,128], index: 6, kind: input, shape index: {}]   ;;  %s1888_s7 = inlined_call_operand.hbm [shape: bf16[128,128], index: 7, kind: input, shape index: {}]   ;;  %s1889_s8 = inlined_call_operand.vmem [shape: f32[1,128], index: 8, kind: input, shape index: {}]   ;;  %s1890_s9 = inlined_call_operand.hbm [shape: bf16[128,128], index: 9, kind: input, shape index: {}]   ;;  %s1891_s10 = inlined_call_operand.vmem [shape: f32[1,128], index: 10, kind: input, shape index: {}]   ;;  %s1892_s11 = inlined_call_operand.hbm [shape: f32[8,128], index: 11, kind: output, shape index: {}]  }
   0x1   :  { %17 = vsyncpa [#allocation6], 0 }
   0x2   :  { %18 = vsyncpa [#allocation9], 0 }
   0x3   :  { %19 = vsyncpa [#allocation12], 0 }
   0x4   :  { %20 = vsyncpa [#allocation4], 0  ;;  %s1725_s17 = smov [#allocation5]  }
   0x5   :  { %s36_s18 = sshll.u32 %s1725_s17, 4  ;;  %s37_s18 = int_to_ptr.vmem [resolvable:$true] %s36_s18 }
   0x6   :  { %s1563_s19 = scalar_lea.vmem %s37_s18, 1024  ;;  %p1568_p1 = scmp.lt.s32.totalorder %s37_s18, %s37_s18 }
   0x7   :  { %p1564_p0 = scmp.ne.s32.totalorder %s37_s18, %s1563_s19  ;;  %p1569_p2 = scmp.lt.s32.totalorder %s1563_s19, %s1563_s19 }
   0x9   :  { %p1570_p3 = por %p1569_p2, %p1568_p1 }
   0xb   :  { %p1571_p4 = pnand %p1570_p3, %p1564_p0 }
   0xd   :  { %1574 = shalt.err (!%p1571_p4)
}
   0xe   :  { %s1726_s20 = smov 256   ;;  %s1727_s21 = smov 16  }
   0xf   :  { %42 = dma.hbm_to_vmem [thread:$0]  %s1882_s1, 1024, %s37_s18, [#allocation6], %s1726_s20, %s1726_s20, %s1727_s21  }
  0x10   :  { %s1728_s24 = smov [#allocation8]  }
  0x11   :  { %s58_s25 = sshll.u32 %s1728_s24, 4  ;;  %s59_s25 = int_to_ptr.vmem [resolvable:$true] %s58_s25 }
  0x12   :  { %s1583_s26 = scalar_lea.vmem %s59_s25, 8192  ;;  %p1588_p6 = scmp.lt.s32.totalorder %s59_s25, %s59_s25 }
  0x13   :  { %p1584_p5 = scmp.ne.s32.totalorder %s59_s25, %s1583_s26  ;;  %p1589_p7 = scmp.lt.s32.totalorder %s1583_s26, %s1583_s26 }
  0x15   :  { %p1590_p8 = por %p1589_p7, %p1588_p6 }
  0x17   :  { %p1591_p9 = pnand %p1590_p8, %p1584_p5 }
  0x19   :  { %1594 = shalt.err (!%p1591_p9)
}
  0x1a   :  { %s1729_s27 = smov 128   ;;  %s1730_s28 = smov 8  }
  0x1b   :  { %64 = dma.hbm_to_vmem [thread:$0]  %s1884_s3, 8192, %s59_s25, [#allocation9], %s1729_s27, %s1729_s27, %s1730_s28  }
  0x1c   :  { %s1731_s12 = smov [#allocation11]   ;;  %s1732_s14 = smov [#allocation2]  }
  0x1d   :  { %s86_s13 = sshll.u32 %s1731_s12, 4  ;;  %s27_s1 = sshll.u32 %s1732_s14, 4  ;;  %s87_s13 = int_to_ptr.vmem [resolvable:$true] %s86_s13  ;;  %s28_s1 = int_to_ptr.vmem [resolvable:$true] %s27_s1 }
  0x1e   :  { %s1603_s15 = scalar_lea.vmem %s87_s13, 1024  ;;  %p1608_p11 = scmp.lt.s32.totalorder %s87_s13, %s87_s13 }
  0x1f   :  { %p1604_p10 = scmp.ne.s32.totalorder %s87_s13, %s1603_s15  ;;  %p1609_p12 = scmp.lt.s32.totalorder %s1603_s15, %s1603_s15 }
  0x21   :  { %p1610_p13 = por %p1609_p12, %p1608_p11 }
  0x23   :  { %p1611_p0 = pnand %p1610_p13, %p1604_p10 }
  0x25   :  { %1614 = shalt.err (!%p1611_p0)
}
  0x26   :  { %s1733_s16 = smov 64   ;;  %s1734_s17 = smov 4  }
  0x27   :  { %92 = dma.hbm_to_vmem [thread:$0]  %s1888_s7, 1024, %s87_s13, [#allocation12], %s1733_s16, %s1733_s16, %s1734_s17  }
  0x28   :  { %s1623_s19 = scalar_lea.vmem %s28_s1, 128  ;;  %p1628_p2 = scmp.lt.s32.totalorder %s28_s1, %s28_s1 }
  0x29   :  { %p1624_p1 = scmp.ne.s32.totalorder %s28_s1, %s1623_s19  ;;  %p1629_p3 = scmp.lt.s32.totalorder %s1623_s19, %s1623_s19 }
  0x2b   :  { %p1630_p4 = por %p1629_p3, %p1628_p2 }
  0x2d   :  { %p1631_p5 = pnand %p1630_p4, %p1624_p1 }
  0x2f   :  { %1634 = shalt.err (!%p1631_p5)
}
  0x30   :  { %30 = dma.hbm_to_vmem [thread:$0]  %s1881_s0, 128, %s28_s1, [#allocation3]  }
  0x31   :  { %s1735_s22 = smov [#allocation7]   ;;  %s1736_s24 = smov [#allocation10]  }
  0x32   :  { %s49_s23 = sshll.u32 %s1735_s22, 4  ;;  %s72_s25 = sshll.u32 %s1736_s24, 4  ;;  %s50_s23 = int_to_ptr.vmem [resolvable:$true] %s49_s23  ;;  %s73_s25 = int_to_ptr.vmem [resolvable:$true] %s72_s25 }
  0x33   :  { %s1643_s26 = scalar_lea.vmem %s50_s23, 64  ;;  %p1648_p7 = scmp.lt.s32.totalorder %s50_s23, %s50_s23 }
  0x34   :  { %p1644_p6 = scmp.ne.s32.totalorder %s50_s23, %s1643_s26  ;;  %p1649_p8 = scmp.lt.s32.totalorder %s1643_s26, %s1643_s26 }
  0x36   :  { %p1650_p9 = por %p1649_p8, %p1648_p7 }
  0x38   :  { %p1651_p10 = pnand %p1650_p9, %p1644_p6 }
  0x3a   :  { %1654 = shalt.err (!%p1651_p10)
}
  0x3b   :  { %52 = dma.hbm_to_vmem [thread:$0]  %s1883_s2, 64, %s50_s23, [#allocation6]  }
  0x3c   :  { %s1663_s28 = scalar_lea.vmem %s73_s25, 2048  ;;  %p1668_p12 = scmp.lt.s32.totalorder %s73_s25, %s73_s25 }
  0x3d   :  { %p1664_p11 = scmp.ne.s32.totalorder %s73_s25, %s1663_s28  ;;  %p1669_p13 = scmp.lt.s32.totalorder %s1663_s28, %s1663_s28 }
  0x3f   :  { %p1670_p0 = por %p1669_p13, %p1668_p12 }
  0x41   :  { %p1671_p1 = pnand %p1670_p0, %p1664_p11 }
  0x43   :  { %1674 = shalt.err (!%p1671_p1)
}
  0x44   :  { %78 = dma.hbm_to_vmem [thread:$0]  %s1886_s5, 2048, %s73_s25, [#allocation9], %s1733_s16, %s1733_s16, %s1734_s17  }
  0x45   :  { %s1737_s30 = smov [#allocation13]  }
  0x46   :  { %s100_s12 = sshll.u32 %s1737_s30, 4  ;;  %s101_s12 = int_to_ptr.vmem [resolvable:$true] %s100_s12 }
  0x47   :  { %s1683_s13 = scalar_lea.vmem %s101_s12, 1024  ;;  %p1688_p3 = scmp.lt.s32.totalorder %s101_s12, %s101_s12 }
  0x48   :  { %p1684_p2 = scmp.ne.s32.totalorder %s101_s12, %s1683_s13  ;;  %p1689_p4 = scmp.lt.s32.totalorder %s1683_s13, %s1683_s13 }
  0x4a   :  { %p1690_p5 = por %p1689_p4, %p1688_p3 }
  0x4c   :  { %p1691_p6 = pnand %p1690_p5, %p1684_p2 }
  0x4e   :  { %1694 = shalt.err (!%p1691_p6)
}
  0x4f   :  { %106 = dma.hbm_to_vmem [thread:$0]  %s1890_s9, 1024, %s101_s12, [#allocation12], %s1733_s16, %s1733_s16, %s1734_s17  }
  0x50   :  { %1715 = dma.done.wait [#allocation3], 128  }
  0x51   :  { %1716 = vsyncadd [#allocation3], 4294967168 }
  0x52   :  { %1717 = dma.done.wait [#allocation6], 1088  }
  0x53   :  { %1718 = vsyncadd [#allocation6], 4294966208 }
  0x54   :  { %1719 = dma.done.wait [#allocation9], 10240  }
  0x55   :  { %1720 = vsyncadd [#allocation9], 4294957056 }
  0x56   :  { %1721 = dma.done.wait [#allocation12], 2048  }
  0x57   :  { %1722 = vsyncadd [#allocation12], 4294965248  ;;  %v1738_v0 = vmov 0   ;;  %v1411_v1 = vld [vmem:[#allocation5 + $0x24] ss:$16 sps:$4 sm:$0xff]   ;;  %v131_v5 = vld [vmem:[#allocation2] sm:$0xff] }
  0x58   :  { %239 = vmatprep.mubr.bf16.mxu1 %v1738_v0  ;;  %v1413_v2 = vld [vmem:[#allocation5 + $0x20] ss:$16 sps:$4 sm:$0xff]   ;;  %219 = vmatprep.subr.bf16.mxu1 %v1411_v1  ;;  %v1414_v3 = vld [vmem:[#allocation5 + $0x4] ss:$16 sps:$4 sm:$0xff]   ;;  %v1419_v6 = vld [vmem:[#allocation5 + $0x2c] ss:$16 sps:$4 sm:$0xff]   ;;  %v132_v8 = vpack.c.bf16 %v131_v5, %v131_v5 }
  0x59   :  { %v1416_v4 = vld [vmem:[#allocation5] ss:$16 sps:$4 sm:$0xff]   ;;  %220 = vmatpush1.bf16.msra.mxu1 %v1413_v2  ;;  %v1417_v7 = vld [vmem:[#allocation5 + $0x28] ss:$16 sps:$4 sm:$0xff]   ;;  %v1425_v10 = vld [vmem:[#allocation8 + $0x70] ss:$8 sps:$4 sm:$0xff]  }
  0x5a   :  { %221 = vmatprep.subr.bf16.mxu1 %v1414_v3  ;;  %v1423_v9 = vld [vmem:[#allocation8 + $0x74] ss:$8 sps:$4 sm:$0xff]   ;;  %vm203_vm0 = vcmask 261120   ;;  %v1426_v11 = vld [vmem:[#allocation8 + $0x64] ss:$8 sps:$4 sm:$0xff]   ;;  %vm1740_vm1 = vmmov 0  }
  0x5b   :  { %v1422_v12 = vld [vmem:[#allocation5 + $0xc] ss:$16 sps:$4 sm:$0xff]   ;;  %693 = vmatprep.subr.bf16.mxu0 %v1423_v9  ;;  %v1429_v14 = vld [vmem:[#allocation8 + $0x54] ss:$8 sps:$4 sm:$0xff]   ;;  %v1435_v18 = vld [vmem:[#allocation8 + $0x44] ss:$8 sps:$4 sm:$0xff]  }
  0x5c   :  { %694 = vmatpush1.bf16.msra.mxu0 %v1425_v10  ;;  %v1428_v13 = vld [vmem:[#allocation8 + $0x60] ss:$8 sps:$4 sm:$0xff]   ;;  %v1420_v15 = vld [vmem:[#allocation5 + $0x8] ss:$16 sps:$4 sm:$0xff]   ;;  %v1434_v17 = vld [vmem:[#allocation8 + $0x50] ss:$8 sps:$4 sm:$0xff]  }
  0x5d   :  { %222 = vmatpush1.bf16.msra.mxu1 %v1416_v4  ;;  %695 = vmatprep.subr.bf16.mxu0 %v1426_v11  ;;  %v1433_v16 = vld [vmem:[#allocation8 + $0x174] ss:$8 sps:$4 sm:$0xff]   ;;  %v1431_v19 = vld [vmem:[#allocation8 + $0x170] ss:$8 sps:$4 sm:$0xff]   ;;  %v1439_v20 = vld [vmem:[#allocation8 + $0x164] ss:$8 sps:$4 sm:$0xff]  }
  0x5e   :  { %260 = vmatprep.subr.bf16.mxu1 %v1419_v6  ;;  %v1440_v21 = vld [vmem:[#allocation8 + $0x40] ss:$8 sps:$4 sm:$0xff]   ;;  %v1441_v22 = vld [vmem:[#allocation8 + $0x34] ss:$8 sps:$4 sm:$0xff]   ;;  %v1446_v25 = vld [vmem:[#allocation8 + $0x30] ss:$8 sps:$4 sm:$0xff]  }
  0x5f   :  { %v1437_v23 = vld [vmem:[#allocation8 + $0x160] ss:$8 sps:$4 sm:$0xff]   ;;  %v1445_v24 = vld [vmem:[#allocation8 + $0x154] ss:$8 sps:$4 sm:$0xff]   ;;  %v1447_v26 = vld [vmem:[#allocation8 + $0x24] ss:$8 sps:$4 sm:$0xff]  }
  0x60   :  { %1213 = vmatmul.mubr.msk.bf16.vlgmr.msra.gmra.mxu1 %vm203_vm0, %v132_v8  ;;  %696 = vmatpush1.bf16.msra.mxu0 %v1428_v13  ;;  %v1443_v27 = vld [vmem:[#allocation8 + $0x150] ss:$8 sps:$4 sm:$0xff]   ;;  %v1451_v28 = vld [vmem:[#allocation8 + $0x144] ss:$8 sps:$4 sm:$0xff]   ;;  %v1452_v29 = vld [vmem:[#allocation8 + $0x20] ss:$8 sps:$4 sm:$0xff]  }
  0x61   :  { %261 = vmatpush1.bf16.msra.mxu1 %v1417_v7  ;;  %280 = vmatprep.mubr.bf16.mxu1 %v1738_v0  ;;  %v1453_v30 = vld [vmem:[#allocation8 + $0x14] ss:$8 sps:$4 sm:$0xff]   ;;  %v1449_v31 = vld [vmem:[#allocation8 + $0x140] ss:$8 sps:$4 sm:$0xff]   ;;  %v1458_v33 = vld [vmem:[#allocation8 + $0x10] ss:$8 sps:$4 sm:$0xff]  }
  0x62   :  { %262 = vmatprep.subr.bf16.mxu1 %v1422_v12  ;;  %697 = vmatprep.subr.bf16.mxu0 %v1429_v14  ;;  %v1457_v32 = vld [vmem:[#allocation8 + $0x134] ss:$8 sps:$4 sm:$0xff]   ;;  %v1459_v34 = vld [vmem:[#allocation8 + $0x4] ss:$8 sps:$4 sm:$0xff]   ;;  %v1455_v35 = vld [vmem:[#allocation8 + $0x130] ss:$8 sps:$4 sm:$0xff]   ;;  %v143_v12 = vlaneseq }
  0x63   :  { %v1463_v36 = vld [vmem:[#allocation8 + $0x124] ss:$8 sps:$4 sm:$0xff]   ;;  %v1464_v37 = vld [vmem:[#allocation8] ss:$8 sps:$4 sm:$0xff]   ;;  %v1465_v38 = vld [vmem:[#allocation8 + $0xf4] ss:$8 sps:$4 sm:$0xff]  }
  0x64   :  { %698 = vmatpush1.bf16.msra.mxu0 %v1434_v17  ;;  %v1461_v39 = vld [vmem:[#allocation8 + $0x120] ss:$8 sps:$4 sm:$0xff]   ;;  %v1469_v40 = vld [vmem:[#allocation8 + $0x114] ss:$8 sps:$4 sm:$0xff]   ;;  %v1470_v41 = vld [vmem:[#allocation8 + $0xf0] ss:$8 sps:$4 sm:$0xff]  }
  0x65   :  { %263 = vmatpush1.bf16.msra.mxu1 %v1420_v15  ;;  %699 = vmatprep.subr.bf16.mxu0 %v1435_v18  ;;  %v1471_v42 = vld [vmem:[#allocation8 + $0xe4] ss:$8 sps:$4 sm:$0xff]   ;;  %v1467_v43 = vld [vmem:[#allocation8 + $0x110] ss:$8 sps:$4 sm:$0xff]   ;;  %v1476_v45 = vld [vmem:[#allocation8 + $0xe0] ss:$8 sps:$4 sm:$0xff]  }
  0x66   :  { %734 = vmatprep.subr.bf16.mxu1 %v1433_v16  ;;  %v1475_v44 = vld [vmem:[#allocation8 + $0x104] ss:$8 sps:$4 sm:$0xff]   ;;  %v1477_v46 = vld [vmem:[#allocation8 + $0xd4] ss:$8 sps:$4 sm:$0xff]   ;;  %v1473_v47 = vld [vmem:[#allocation8 + $0x100] ss:$8 sps:$4 sm:$0xff]  }
  0x67   :  { %v1481_v48 = vld [vmem:[#allocation8 + $0x1f4] ss:$8 sps:$4 sm:$0xff]   ;;  %v1482_v49 = vld [vmem:[#allocation8 + $0xd0] ss:$8 sps:$4 sm:$0xff]   ;;  %v1483_v50 = vld [vmem:[#allocation8 + $0xc4] ss:$8 sps:$4 sm:$0xff]  }
  0x68   :  { %1214 = vmatmul.mubr.msk.bf16.vlgmr.msra.gmra.mxu1 %vm203_vm0, %v132_v8  ;;  %700 = vmatpush1.bf16.msra.mxu0 %v1440_v21  ;;  %v1479_v51 = vld [vmem:[#allocation8 + $0x1f0] ss:$8 sps:$4 sm:$0xff]   ;;  %v1487_v52 = vld [vmem:[#allocation8 + $0x1e4] ss:$8 sps:$4 sm:$0xff]   ;;  %v1488_v53 = vld [vmem:[#allocation8 + $0xc0] ss:$8 sps:$4 sm:$0xff]  }
  0x69   :  { %735 = vmatpush1.bf16.msra.mxu1 %v1431_v19  ;;  %701 = vmatprep.subr.bf16.mxu0 %v1441_v22  ;;  %v1489_v54 = vld [vmem:[#allocation8 + $0xb4] ss:$8 sps:$4 sm:$0xff]   ;;  %v1485_v55 = vld [vmem:[#allocation8 + $0x1e0] ss:$8 sps:$4 sm:$0xff]   ;;  %v1494_v57 = vld [vmem:[#allocation8 + $0xb0] ss:$8 sps:$4 sm:$0xff]  }
  0x6a   :  { %736 = vmatprep.subr.bf16.mxu1 %v1439_v20  ;;  %v1493_v56 = vld [vmem:[#allocation8 + $0x1d4] ss:$8 sps:$4 sm:$0xff]   ;;  %v1495_v58 = vld [vmem:[#allocation8 + $0xa4] ss:$8 sps:$4 sm:$0xff]   ;;  %v1491_v59 = vld [vmem:[#allocation8 + $0x1d0] ss:$8 sps:$4 sm:$0xff]  }
  0x6b   :  { %v1499_v60 = vld [vmem:[#allocation8 + $0x1c4] ss:$8 sps:$4 sm:$0xff]   ;;  %v1500_v61 = vld [vmem:[#allocation8 + $0xa0] ss:$8 sps:$4 sm:$0xff]   ;;  %v1501_v63 = vld [vmem:[#allocation8 + $0x94] ss:$8 sps:$4 sm:$0xff]  }
  0x6c   :  { %702 = vmatpush1.bf16.msra.mxu0 %v1446_v25  ;;  %v1497_v62 = vld [vmem:[#allocation8 + $0x1c0] ss:$8 sps:$4 sm:$0xff]   ;;  %v1505_v0 = vld [vmem:[#allocation8 + $0x1b4] ss:$8 sps:$4 sm:$0xff]   ;;  %v1503_v1 = vld [vmem:[#allocation8 + $0x1b0] ss:$8 sps:$4 sm:$0xff]  }
  0x6d   :  { %737 = vmatpush1.bf16.msra.mxu1 %v1437_v23  ;;  %703 = vmatprep.subr.bf16.mxu0 %v1447_v26  ;;  %v1506_v2 = vld [vmem:[#allocation8 + $0x90] ss:$8 sps:$4 sm:$0xff]   ;;  %v1507_v3 = vld [vmem:[#allocation8 + $0x84] ss:$8 sps:$4 sm:$0xff]   ;;  %v1509_v5 = vld [vmem:[#allocation8 + $0x1a0] ss:$8 sps:$4 sm:$0xff]  }
  0x6e   :  { %738 = vmatprep.subr.bf16.mxu1 %v1445_v24  ;;  %v1511_v4 = vld [vmem:[#allocation8 + $0x1a4] ss:$8 sps:$4 sm:$0xff]   ;;  %v1512_v6 = vld [vmem:[#allocation8 + $0x80] ss:$8 sps:$4 sm:$0xff]   ;;  %v1515_v7 = vld [vmem:[#allocation8 + $0x194] ss:$8 sps:$4 sm:$0xff]  }
  0x6f   :  { %v1513_v8 = vld [vmem:[#allocation8 + $0x190] ss:$8 sps:$4 sm:$0xff]   ;;  %v1518_v9 = vld [vmem:[#allocation8 + $0x184] ss:$8 sps:$4 sm:$0xff]   ;;  %v1516_v10 = vld [vmem:[#allocation8 + $0x180] ss:$8 sps:$4 sm:$0xff]  }
  0x70   :  { %704 = vmatpush1.bf16.msra.mxu0 %v1452_v29  ;;  %v1519_v11 = vld [vmem:[#allocation10 + $0x78] sm:$0xff]   ;;  %v1834_v13 = vshrl.u32 %v143_v12, 7 }
  0x71   :  { %739 = vmatpush1.bf16.msra.mxu1 %v1443_v27  ;;  %705 = vmatprep.subr.bf16.mxu0 %v1453_v30  ;;  %v141_v15 = vld [vmem:[#allocation7] sm:$0xf] }
  0x72   :  { %740 = vmatprep.subr.bf16.mxu1 %v1451_v28  ;;  %v145_v14 = vsub.s32 0, %v1834_v13  ;;  %v149_v16 = vsub.s32 1, %v1834_v13  ;;  %v153_v21 = vsub.s32 2, %v1834_v13  ;;  %v157_v24 = vsub.s32 3, %v1834_v13  ;;  %v1541_v13 = vld [vmem:[#allocation11 + $0x8] sm:$0xff]  }
  0x74   :  { %706 = vmatpush1.bf16.msra.mxu0 %v1458_v33  ;;  %v146_v17 = vrot.slane %v141_v15, %v145_v14  ;;  %v150_v18 = vrot.slane %v141_v15, %v149_v16  ;;  %v154_v27 = vrot.slane %v141_v15, %v153_v21 }
  0x75   :  { %741 = vmatpush1.bf16.msra.mxu1 %v1449_v31  ;;  %707 = vmatprep.subr.bf16.mxu0 %v1459_v34  ;;  %v158_v31 = vrot.slane %v141_v15, %v157_v24  ;;  %v1545_v24 = vld [vmem:[#allocation13 + $0x28] sm:$0xff]  }
  0x76   :  { %742 = vmatprep.subr.bf16.mxu1 %v1457_v32  ;;  %v1520_v32 = vld [vmem:[#allocation10 + $0x38] sm:$0xff]  }
  0x78   :  { %708 = vmatpush1.bf16.msra.mxu0 %v1464_v37 }
  0x79   :  { %743 = vmatpush1.bf16.msra.mxu1 %v1455_v35  ;;  %709 = vmatprep.subr.bf16.mxu0 %v1465_v38  ;;  %v1521_v35 = vld [vmem:[#allocation10 + $0x70] sm:$0xff]  }
  0x7a   :  { %744 = vmatprep.subr.bf16.mxu1 %v1463_v36 }
  0x7c   :  { %710 = vmatpush2.bf16.msra.mxu0 %v1470_v41 }
  0x7d   :  { %745 = vmatpush1.bf16.msra.mxu1 %v1461_v39  ;;  %711 = vmatprep.subr.bf16.mxu0 %v1471_v42  ;;  %v1522_v39 = vld [vmem:[#allocation10 + $0x30] sm:$0xff]   ;;  %v1523_v42 = vld [vmem:[#allocation10 + $0x68] sm:$0xff]  }
  0x7e   :  { %746 = vmatprep.subr.bf16.mxu1 %v1469_v40 }
  0x80   :  { %712 = vmatpush2.bf16.msra.mxu0 %v1476_v45 }
  0x81   :  { %747 = vmatpush1.bf16.msra.mxu1 %v1467_v43  ;;  %713 = vmatprep.subr.bf16.mxu0 %v1477_v46  ;;  %v1524_v46 = vld [vmem:[#allocation10 + $0x28] sm:$0xff]  }
  0x82   :  { %748 = vmatprep.subr.bf16.mxu1 %v1475_v44 }
  0x84   :  { %714 = vmatpush2.bf16.msra.mxu0 %v1482_v49  ;;  %v1526_v49 = vld [vmem:[#allocation10 + $0x20] sm:$0xff]  }
  0x85   :  { %749 = vmatpush1.bf16.msra.mxu1 %v1473_v47  ;;  %715 = vmatprep.subr.bf16.mxu0 %v1483_v50  ;;  %v1527_v50 = vld [vmem:[#allocation10 + $0x58] sm:$0xff]  }
  0x86   :  { %750 = vmatprep.subr.bf16.mxu1 %v1481_v48  ;;  %v1525_v48 = vld [vmem:[#allocation10 + $0x60] sm:$0xff]  }
  0x88   :  { %716 = vmatpush2.bf16.msra.mxu0 %v1488_v53  ;;  %v1530_v53 = vld [vmem:[#allocation10 + $0x10] sm:$0xff]  }
  0x89   :  { %751 = vmatpush2.bf16.msra.mxu1 %v1479_v51  ;;  %717 = vmatprep.subr.bf16.mxu0 %v1489_v54  ;;  %v1528_v51 = vld [vmem:[#allocation10 + $0x18] sm:$0xff]   ;;  %v1531_v54 = vld [vmem:[#allocation10 + $0x48] sm:$0xff]  }
  0x8a   :  { %752 = vmatprep.subr.bf16.mxu1 %v1487_v52  ;;  %v1529_v52 = vld [vmem:[#allocation10 + $0x50] sm:$0xff]  }
  0x8c   :  { %718 = vmatpush2.bf16.msra.mxu0 %v1494_v57  ;;  %v1534_v57 = vld [vmem:[#allocation10] sm:$0xff]  }
  0x8d   :  { %753 = vmatpush2.bf16.msra.mxu1 %v1485_v55  ;;  %719 = vmatprep.subr.bf16.mxu0 %v1495_v58  ;;  %v1532_v55 = vld [vmem:[#allocation10 + $0x8] sm:$0xff]   ;;  %v1535_v58 = vld [vmem:[#allocation11 + $0x38] sm:$0xff]  }
  0x8e   :  { %754 = vmatprep.subr.bf16.mxu1 %v1493_v56  ;;  %v1533_v56 = vld [vmem:[#allocation10 + $0x40] sm:$0xff]  }
  0x90   :  { %720 = vmatpush2.bf16.msra.mxu0 %v1500_v61  ;;  %v1537_v61 = vld [vmem:[#allocation11 + $0x28] sm:$0xff]  }
  0x91   :  { %755 = vmatpush2.bf16.msra.mxu1 %v1491_v59  ;;  %721 = vmatprep.subr.bf16.mxu0 %v1501_v63  ;;  %v1739_v59 = vmov 0.0   ;;  %v1539_v63 = vld [vmem:[#allocation11 + $0x18] sm:$0xff]  }
  0x92   :  { %756 = vmatprep.subr.bf16.mxu1 %v1499_v60  ;;  %v1536_v60 = vld [vmem:[#allocation11 + $0x30] sm:$0xff]  }
  0x94   :  { %722 = vmatpush2.bf16.msra.mxu0 %v1506_v2 }
  0x95   :  { %757 = vmatpush2.bf16.msra.mxu1 %v1497_v62  ;;  %723 = vmatprep.subr.bf16.mxu0 %v1507_v3  ;;  %v1538_v62 = vld [vmem:[#allocation11 + $0x20] sm:$0xff]  }
  0x96   :  { %758 = vmatprep.subr.bf16.mxu1 %v1505_v0  ;;  %v361_v0 = vld [vmem:[%s1885_s4] sm:$0x3] }
  0x97   :  { %v366_v3 = vrot.slane %v361_v0, %v145_v14  ;;  %v1540_v14 = vld [vmem:[#allocation11 + $0x10] sm:$0xff]  }
  0x98   :  { %724 = vmatpush2.bf16.msra.mxu0 %v1512_v6 }
  0x99   :  { %759 = vmatpush2.bf16.msra.mxu1 %v1503_v1  ;;  %1314 = vmatprep.subr.bf16.mxu0 %v1519_v11 }
  0x9a   :  { %760 = vmatprep.subr.bf16.mxu1 %v1511_v4 }
  0x9d   :  { %761 = vmatpush2.bf16.msra.mxu1 %v1509_v5  ;;  %v370_v5 = vrot.slane %v361_v0, %v149_v16  ;;  %v1542_v16 = vld [vmem:[#allocation11] sm:$0xff]  }
  0x9e   :  { %762 = vmatprep.subr.bf16.mxu1 %v1515_v7 }
  0xa1   :  { %763 = vmatpush2.bf16.msra.mxu1 %v1513_v8 }
  0xa2   :  { %764 = vmatprep.subr.bf16.mxu1 %v1518_v9 }
  0xa5   :  { %765 = vmatpush2.bf16.msra.mxu1 %v1516_v10 }
  0xa6   :  { %1354 = vmatprep.subr.bf16.mxu1 %v1739_v59 }
 0x120   :  { %v241_v19 = vpop.f32.mrf.mxu1 }
 0x121   :  { %v242_v20 = vadd.f32 %v241_v19, %v146_v17 }
 0x122   :  { %v243_v22 = vpop.f32.mrf.mxu1 }
 0x123   :  { %v244_v23 = vadd.f32 %v243_v22, %v150_v18  ;;  %v289_v25 = vmax.f32 %v242_v20, 0.0  ;;  %v1543_v22 = vld [vmem:[#allocation13 + $0x38] sm:$0xff]  }
 0x124   :  { %v245_v26 = vpop.f32.mrf.mxu1 }
 0x125   :  { %v290_v28 = vmax.f32 %v244_v23, 0.0  ;;  %v293_v33 = vpack.c.bf16 %v289_v25, %v289_v25  ;;  %v1544_v23 = vld [vmem:[#allocation13 + $0x30] sm:$0xff]   ;;  %v1546_v25 = vld [vmem:[#allocation13 + $0x20] sm:$0xff]   ;;  %v1547_v26 = vld [vmem:[#allocation13 + $0x18] sm:$0xff]  }
 0x126   :  { %v246_v29 = vpop.f32.mrf.mxu1 }
 0x127   :  { %v294_v30 = vpack.c.bf16 %v290_v28, %v290_v28  ;;  %v1279_v29 = vld [vmem:[%s1887_s6] ss:$0 sm:$0xff] }
 0x128   :  { %v282_v34 = vpop.f32.mrf.mxu1 }
 0x129   :  { %v283_v36 = vadd.f32 %v282_v34, %v154_v27  ;;  %725 = vmatprep.mubr.bf16.mxu0 %v294_v30  ;;  %v1548_v27 = vld [vmem:[#allocation13 + $0x10] sm:$0xff]  }
 0x12a   :  { %v284_v37 = vpop.f32.mrf.mxu1  ;;  %726 = vmatmul.mubr.bf16.vlgmr.msra.gmra.mxu0 %v293_v33 }
 0x12b   :  { %v285_v38 = vadd.f32 %v284_v37, %v158_v31  ;;  %1315 = vmatpush3.bf16.msra.mxu0 %v1520_v32  ;;  %v291_v40 = vmax.f32 %v283_v36, 0.0  ;;  %v1549_v37 = vld [vmem:[#allocation13 + $0x8] sm:$0xff]  }
 0x12c   :  { %v286_v41 = vpop.f32.mrf.mxu1  ;;  %1316 = vmatprep.subr.bf16.mxu0 %v1521_v35 }
 0x12d   :  { %v292_v43 = vmax.f32 %v285_v38, 0.0  ;;  %v295_v47 = vpack.c.bf16 %v291_v40, %v291_v40  ;;  %v1550_v38 = vld [vmem:[#allocation13] sm:$0xff]  }
 0x12e   :  { %v287_v44 = vpop.f32.mrf.mxu1 }
 0x12f   :  { %v296_v45 = vpack.c.bf16 %v292_v43, %v292_v43  ;;  %1317 = vmatpush3.bf16.msra.mxu0 %v1522_v39  ;;  %v1296_v39 = vld [vmem:[%s1889_s8] ss:$0 sm:$0xff]  ;;  %s1741_s8 = smov [#allocation14]  }
 0x130   :  { %1318 = vmatprep.subr.bf16.mxu0 %v1523_v42  ;;  %s1193_s18 = sshll.u32 %s1741_s8, 4  ;;  %s1194_s18 = int_to_ptr.vmem [resolvable:$true] %s1193_s18 }
 0x131   :  { %766 = vmatprep.mubr.bf16.mxu1 %v296_v45  ;;  %s1695_s3 = scalar_lea.vmem %s1194_s18, 128  ;;  %p1700_p8 = scmp.lt.s32.totalorder %s1194_s18, %s1194_s18 }
 0x132   :  { %767 = vmatmul.mubr.bf16.vlgmr.msra.gmra.mxu1 %v295_v47  ;;  %v1305_v47 = vld [vmem:[%s1891_s10] ss:$0 sm:$0xff]  ;;  %p1696_p7 = scmp.ne.s32.totalorder %s1194_s18, %s1695_s3  ;;  %p1701_p9 = scmp.lt.s32.totalorder %s1695_s3, %s1695_s3 }
 0x133   :  { %1319 = vmatpush3.bf16.msra.mxu0 %v1524_v46  ;;  %1355 = vmatpush3.bf16.msra.mxu1 %v1535_v58 }
 0x134   :  { %1320 = vmatprep.subr.bf16.mxu0 %v1525_v48  ;;  %1356 = vmatprep.subr.bf16.mxu1 %v1739_v59  ;;  %p1702_p10 = por %p1701_p9, %p1700_p8 }
 0x135   :  { %1370 = vmatprep.mubr.msk.bf16.mxu1 %vm1740_vm1, %v1739_v59 }
 0x136   :  { %p1703_p11 = pnand %p1702_p10, %p1696_p7 }
 0x137   :  { %1321 = vmatpush3.bf16.msra.mxu0 %v1526_v49  ;;  %1357 = vmatpush3.bf16.msra.mxu1 %v1536_v60 }
 0x138   :  { %1322 = vmatprep.subr.bf16.mxu0 %v1527_v50  ;;  %1358 = vmatprep.subr.bf16.mxu1 %v1739_v59 }
 0x13b   :  { %1323 = vmatpush3.bf16.msra.mxu0 %v1528_v51  ;;  %1359 = vmatpush3.bf16.msra.mxu1 %v1537_v61 }
 0x13c   :  { %1324 = vmatprep.subr.bf16.mxu0 %v1529_v52  ;;  %1360 = vmatprep.subr.bf16.mxu1 %v1739_v59 }
 0x13f   :  { %1325 = vmatpush3.bf16.msra.mxu0 %v1530_v53  ;;  %1361 = vmatpush3.bf16.msra.mxu1 %v1538_v62 }
 0x140   :  { %1326 = vmatprep.subr.bf16.mxu0 %v1531_v54  ;;  %1362 = vmatprep.subr.bf16.mxu1 %v1739_v59 }
 0x143   :  { %1327 = vmatpush3.bf16.msra.mxu0 %v1532_v55  ;;  %1363 = vmatpush3.bf16.msra.mxu1 %v1539_v63 }
 0x144   :  { %1328 = vmatprep.subr.bf16.mxu0 %v1533_v56  ;;  %1364 = vmatprep.subr.bf16.mxu1 %v1739_v59 }
 0x147   :  { %1329 = vmatpush3.bf16.msra.mxu0 %v1534_v57  ;;  %1365 = vmatpush3.bf16.msra.mxu1 %v1540_v14 }
 0x148   :  { %1374 = vmatprep.subr.bf16.mxu0 %v1739_v59  ;;  %1366 = vmatprep.subr.bf16.mxu1 %v1739_v59 }
 0x14b   :  { %1367 = vmatpush3.bf16.msra.mxu1 %v1541_v13 }
 0x14c   :  { %1368 = vmatprep.subr.bf16.mxu1 %v1739_v59 }
 0x14f   :  { %1369 = vmatpush3.bf16.msra.mxu1 %v1542_v16 }
 0x1ea   :  { %v727_v1 = vpop.f32.mrf.mxu0 }
 0x1eb   :  { %v728_v7 = vadd.f32 %v727_v1, %v366_v3 }
 0x1ec   :  { %v729_v2 = vpop.f32.mrf.mxu0 }
 0x1ed   :  { %v730_v9 = vadd.f32 %v729_v2, %v370_v5 }
 0x1ee   :  { %v731_v4 = vpop.f32.mrf.mxu0 }
 0x1f0   :  { %v732_v6 = vpop.f32.mrf.mxu0 }
 0x1f2   :  { %v768_v8 = vpop.f32.mrf.mxu1 }
 0x1f3   :  { %v769_v10 = vadd.f32 %v768_v8, %v728_v7 }
 0x1f4   :  { %v770_v11 = vpop.f32.mrf.mxu1 }
 0x1f5   :  { %v771_v12 = vadd.f32 %v770_v11, %v730_v9  ;;  %v775_v15 = vmax.f32 %v769_v10, 0.0 }
 0x1f6   :  { %v772_v17 = vpop.f32.mrf.mxu1 }
 0x1f7   :  { %v776_v18 = vmax.f32 %v771_v12, 0.0  ;;  %v777_v21 = vpack.c.bf16 %v775_v15, %v775_v15 }
 0x1f8   :  { %v773_v19 = vpop.f32.mrf.mxu1 }
 0x1f9   :  { %v778_v20 = vpack.c.bf16 %v776_v18, %v776_v18 }
 0x1fb   :  { %946 = vmatprep.mubr.bf16.mxu0 %v778_v20 }
 0x1fc   :  { %947 = vmatmul.mubr.bf16.vlgmr.msra.gmra.mxu0 %v777_v21 }
 0x1fd   :  { %1390 = vmatprep.mubr.msk.bf16.mxu0 %vm1740_vm1, %v1739_v59  ;;  %1375 = vmatpush3.bf16.msra.mxu0 %v1543_v22 }
 0x1fe   :  { %1376 = vmatprep.subr.bf16.mxu0 %v1739_v59 }
 0x201   :  { %1377 = vmatpush3.bf16.msra.mxu0 %v1544_v23 }
 0x202   :  { %1378 = vmatprep.subr.bf16.mxu0 %v1739_v59 }
 0x205   :  { %1379 = vmatpush3.bf16.msra.mxu0 %v1545_v24 }
 0x206   :  { %1380 = vmatprep.subr.bf16.mxu0 %v1739_v59 }
 0x209   :  { %1381 = vmatpush3.bf16.msra.mxu0 %v1546_v25 }
 0x20a   :  { %1382 = vmatprep.subr.bf16.mxu0 %v1739_v59 }
 0x20d   :  { %1383 = vmatpush3.bf16.msra.mxu0 %v1547_v26 }
 0x20e   :  { %1384 = vmatprep.subr.bf16.mxu0 %v1739_v59 }
 0x211   :  { %1385 = vmatpush3.bf16.msra.mxu0 %v1548_v27 }
 0x212   :  { %1386 = vmatprep.subr.bf16.mxu0 %v1739_v59 }
 0x215   :  { %1387 = vmatpush3.bf16.msra.mxu0 %v1549_v37 }
 0x216   :  { %1388 = vmatprep.subr.bf16.mxu0 %v1739_v59 }
 0x219   :  { %1389 = vmatpush3.bf16.msra.mxu0 %v1550_v38 }
 0x2bc   :  { %v1330_v28 = vpop.f32.mrf.mxu0 }
 0x2be   :  { %v1331_v30 = vpop.f32.mrf.mxu0 }
 0x2bf   :  { %v1332_v31 = vadd.f32 %v1331_v30, %v1330_v28 }
 0x2c0   :  { %v1333_v32 = vpop.f32.mrf.mxu0 }
 0x2c1   :  { %v949_v33 = vadd.f32 %v1332_v31, %v1279_v29 }
 0x2c2   :  { %v1334_v34 = vpop.f32.mrf.mxu0 }
 0x2c3   :  { %v954_v35 = vmax.f32 %v949_v33, 0.0 }
 0x2c5   :  { %v955_v36 = vpack.c.bf16 %v954_v35, %v954_v35 }
 0x2c7   :  { %1371 = vmatmul.mubr.bf16.vlgmr.msra.gmra.mxu1 %v955_v36 }
 0x387   :  { %v1061_v40 = vpop.f32.mrf.mxu1 }
 0x388   :  { %v1062_v41 = vadd.f32 %v1296_v39, %v1061_v40 }
 0x389   :  { %v1372_v42 = vpop.f32.mrf.mxu1 }
 0x38a   :  { %v1067_v43 = vmax.f32 %v1062_v41, 0.0 }
 0x38b   :  { %v1064_v44 = vpop.f32.mrf.mxu1 }
 0x38c   :  { %v1068_v45 = vpack.c.bf16 %v1067_v43, %v1067_v43 }
 0x38d   :  { %v1373_v46 = vpop.f32.mrf.mxu1 }
 0x38e   :  { %1391 = vmatmul.mubr.bf16.vlgmr.msra.gmra.mxu0 %v1068_v45 }
 0x44e   :  { %v1174_v48 = vpop.f32.mrf.mxu0 }
 0x44f   :  { %v1175_v49 = vadd.f32 %v1305_v47, %v1174_v48 }
 0x450   :  { %v1392_v50 = vpop.f32.mrf.mxu0 }
 0x451   :  { %v1180_v51 = vsub.f32 0.0, %v1175_v49 }
 0x452   :  { %v1177_v52 = vpop.f32.mrf.mxu0 }
 0x453   :  { %v1181_v53 = vmul.f32 1.442695, %v1180_v51 }
 0x454   :  { %v1393_v54 = vpop.f32.mrf.mxu0 }
 0x455   :  { %1551 = vpow2.f32 %v1181_v53 }
 0x462   :  { %v1552_v55 = vpop.eup %1551 }
 0x463   :  { %v1183_v56 = vadd.f32 1.0, %v1552_v55 }
 0x465   :  { %1553 = vrcp.f32 %v1183_v56 }
 0x472   :  { %v1554_v57 = vpop.eup %1553 }
 0x473   :  { %1186 = vst [vmem:[#allocation14] sm:$0xff] %v1554_v57 }
 0x474   :  { %1706 = shalt.err (!%p1703_p11)
}
 0x475   :  { %1196 = dma.vmem_to_hbm [thread:$0]  %s1194_s18, 128, %s1892_s11, [#allocation4]  }
 0x476   :  { %1723 = dma.done.wait [#allocation4], 128  }
 0x477   :  { %1724 = vsyncadd [#allocation4], 4294967168 }
 0x478   :  { %1200 = vsyncpa [#allocation3], 1 }
 0x479   :  { %1201 = vsyncpa [#allocation6], 1 }
 0x47a   :  { %1202 = vsyncpa [#allocation9], 1 }
 0x47b   :  { %1203 = vsyncpa [#allocation12], 1 }
 0x47c   :  { %1204 = vsyncpa [#allocation4], 1 }

</bundles_post_ra>
